<compile_context>
chip_gen: v6e
topology: v6e:2x2x1
jax: 0.10.0
libtpu: 0.0.40
codegen_flags: <defaults>
</compile_context>

<pallas_src>
import numpy as np
import jax
import jax.numpy as jnp
from jax.experimental import pallas as pl
from jax.experimental.pallas import tpu as pltpu


def gcn_kernel(x_ref, wT_ref, b_ref, o_ref):
    # x: (Bp, Np) f32, wT: (Np, Np) f32 (pre-transposed dense weights), b: (1, Np) f32
    val = jnp.dot(x_ref[...], wT_ref[...], preferred_element_type=jnp.float32)
    o_ref[...] = jax.nn.sigmoid(val + b_ref[...])


def _pad_to(n, m):
    return ((n + m - 1) // m) * m


@jax.jit
def gcn_layer(x, adjacency, weight, bias):
    """x: (B, N) f32, adjacency: (N, K) i32, weight: (N, K) f32, bias: (N,) f32."""
    batch, n_nodes = x.shape
    _, k = adjacency.shape

    n_pad = _pad_to(n_nodes, 128)   # lane-dense node dim (68 -> 128)
    b_pad = _pad_to(batch, 8)       # sublane-aligned batch dim

    # Densify + transpose in the wrapper (scatter-add, runs as a tiny XLA op,
    # amortized/fused by jit):  wT[v, u] = sum_j weight[u, j] * (adjacency[u, j] == v)
    rows = adjacency                                                        # (N, K) -> v
    cols = jnp.broadcast_to(
        jnp.arange(n_nodes, dtype=jnp.int32)[:, None], (n_nodes, k))        # (N, K) -> u
    w_dense_T = jnp.zeros((n_pad, n_pad), jnp.float32).at[rows, cols].add(
        weight.astype(jnp.float32))

    x_p = jnp.zeros((b_pad, n_pad), jnp.float32).at[:batch, :n_nodes].set(
        x.astype(jnp.float32))
    bias_p = jnp.zeros((1, n_pad), jnp.float32).at[0, :n_nodes].set(
        bias.astype(jnp.float32))

    out_p = pl.pallas_call(
        gcn_kernel,
        out_shape=jax.ShapeDtypeStruct((b_pad, n_pad), jnp.float32),
        in_specs=[pl.BlockSpec(memory_space=pltpu.MemorySpace.VMEM)] * 3,
        out_specs=pl.BlockSpec(memory_space=pltpu.MemorySpace.VMEM),
    )(x_p, w_dense_T, bias_p)

    return out_p[:batch, :n_nodes]


if __name__ == "__main__":
    n_nodes, k, batch = 68, 32, 8

    key = jax.random.PRNGKey(0)
    kx, kw = jax.random.split(key)

    # Deterministic inputs / parameters (matching the module's __init__ shapes).
    x = jax.random.normal(kx, (batch, n_nodes), dtype=jnp.float32)

    # xavier_uniform_ on weight (n_nodes, k): U(-a, a), a = sqrt(6 / (fan_in + fan_out))
    bound = float(np.sqrt(6.0 / (n_nodes + k)))
    weight = jax.random.uniform(kw, (n_nodes, k), jnp.float32, -bound, bound)
    bias = jnp.zeros((n_nodes,), jnp.float32)

    # Deterministic adjacency: node u's k neighbors are (u+1 .. u+k) mod N.
    adj_np = (np.arange(1, k + 1)[None, :] + np.arange(n_nodes)[:, None]) % n_nodes
    adjacency = jnp.asarray(adj_np, dtype=jnp.int32)

    out = gcn_layer(x, adjacency, weight, bias)
    out = jax.block_until_ready(out)

    # Pure-JAX reference (mirrors the PyTorch per-node loop, vectorized).
    x_nb = x[:, adjacency]                                   # (B, N, K)
    ref = jax.nn.sigmoid(jnp.sum(x_nb * weight[None], axis=-1) + bias[None])
    assert out.shape == (batch, n_nodes)
    assert jnp.allclose(out, ref, atol=1e-5, rtol=1e-5), "mismatch vs reference"

    print("KERNEL_OK")
</pallas_src>

<mosaic_0001>
module attributes {stable_mosaic.version = 11 : i64} {
  func.func private @main(%arg0: i32) attributes {dimension_semantics = [#tpu.dimension_semantics<core_parallel>], iteration_bounds = array<i64: 2>, tpu.core_type = #tpu.core_type<sc_scalar_subcore>, window_params = []} {
    return
  }
}

module attributes {stable_mosaic.version = 11 : i64} {
  func.func private @main(%arg0: i32) attributes {dimension_semantics = [#tpu.dimension_semantics<core_parallel>], iteration_bounds = array<i64: 2>, tpu.core_type = #tpu.core_type<sc_scalar_subcore>, window_params = []} {
    return
  }
}

module attributes {stable_mosaic.version = 11 : i64} {
  func.func @gcn_kernel(%arg0: memref<8x128xf32, #tpu.memory_space<vmem>>, %arg1: memref<128x128xf32, #tpu.memory_space<vmem>>, %arg2: memref<1x128xf32, #tpu.memory_space<vmem>>, %arg3: memref<8x128xf32, #tpu.memory_space<vmem>>) attributes {dimension_semantics = [], scalar_prefetch = 0 : i64, scratch_operands = 0 : i64, tpu.core_type = #tpu.core_type<tc>} {
    %c0 = arith.constant 0 : index
    %c0_0 = arith.constant 0 : index
    %0 = vector.load %arg0[%c0, %c0_0] : memref<8x128xf32, #tpu.memory_space<vmem>>, vector<8x128xf32>
    %c0_1 = arith.constant 0 : index
    %c0_2 = arith.constant 0 : index
    %1 = vector.load %arg1[%c0_1, %c0_2] : memref<128x128xf32, #tpu.memory_space<vmem>>, vector<128x128xf32>
    %cst = arith.constant dense<0.000000e+00> : vector<8x128xf32>
    %2 = tpu.matmul %0, %1, %cst {dimension_numbers = #tpu.dot_dimension_numbers<[1], [0], [0], [1], [0, 0, 1, 1], [], []>} : vector<8x128xf32>, vector<128x128xf32>, vector<8x128xf32> -> vector<8x128xf32>
    %c0_3 = arith.constant 0 : index
    %c0_4 = arith.constant 0 : index
    %3 = vector.load %arg2[%c0_3, %c0_4] : memref<1x128xf32, #tpu.memory_space<vmem>>, vector<1x128xf32>
    %4 = vector.broadcast %3 : vector<1x128xf32> to vector<8x128xf32>
    %5 = arith.addf %2, %4 : vector<8x128xf32>
    %6 = arith.negf %5 : vector<8x128xf32>
    %7 = math.exp %6 : vector<8x128xf32>
    %cst_5 = arith.constant 1.000000e+00 : f32
    %8 = vector.broadcast %cst_5 : f32 to vector<8x128xf32>
    %9 = arith.addf %8, %7 : vector<8x128xf32>
    %10 = arith.divf %8, %9 : vector<8x128xf32>
    %c0_6 = arith.constant 0 : index
    %c0_7 = arith.constant 0 : index
    %11 = vector.load %arg3[%c0_6, %c0_7] : memref<8x128xf32, #tpu.memory_space<vmem>>, vector<8x128xf32>
    tpu.vector_store %arg3[%c0_6, %c0_7], %10 {strides = array<i32>} : memref<8x128xf32, #tpu.memory_space<vmem>>, vector<8x128xf32>,
    return
  }
}

</mosaic_0001>

<bundles_post_ra>
// kernel: gcn_layer.1
= control target key start
LH: loop header
LB: loop body
LE: loop exit
PB: predicated region body
PF: predicated region fallthrough
CT: control target
= control target key end

     0   :  { %8 = vsyncpa [#allocation3], 0  ;;  %s291_s0 = inlined_call_operand.vmem [shape: f32[8,128], index: 0, kind: input, shape index: {}]   ;;  %s292_s1 = inlined_call_operand.hbm [shape: f32[128,128], index: 1, kind: input, shape index: {}]   ;;  %s293_s2 = inlined_call_operand.vmem [shape: f32[1,128], index: 2, kind: input, shape index: {}]   ;;  %s294_s3 = inlined_call_operand.hbm [shape: f32[8,128], index: 3, kind: output, shape index: {}]  }
   0x1   :  { %9 = vsyncpa [#allocation4], 0  ;;  %s253_s12 = smov [#allocation2]  }
   0x2   :  { %s17_s13 = sshll.u32 %s253_s12, 4  ;;  %s18_s13 = int_to_ptr.vmem [resolvable:$true] %s17_s13 }
   0x3   :  { %s217_s14 = scalar_lea.vmem %s18_s13, 2048  ;;  %p222_p1 = scmp.lt.s32.totalorder %s18_s13, %s18_s13 }
   0x4   :  { %p218_p0 = scmp.ne.s32.totalorder %s18_s13, %s217_s14  ;;  %p223_p2 = scmp.lt.s32.totalorder %s217_s14, %s217_s14 }
   0x6   :  { %p224_p3 = por %p223_p2, %p222_p1 }
   0x8   :  { %p225_p4 = pnand %p224_p3, %p218_p0 }
   0xa   :  { %228 = shalt.err (!%p225_p4)
}
   0xb   :  { %s254_s15 = smov 128   ;;  %s255_s16 = smov 8  }
   0xc   :  { %23 = dma.hbm_to_vmem [thread:$0]  %s292_s1, 2048, %s18_s13, [#allocation3], %s254_s15, %s254_s15, %s255_s16  }
   0xd   :  { %249 = dma.done.wait [#allocation3], 2048  }
   0xe   :  { %250 = vsyncadd [#allocation3], 4294965248  ;;  %v256_v0 = vmov 0.0   ;;  %vm257_vm0 = vmmov 0   ;;  %v45_v1 = vld [vmem:[#allocation2 + $0x78] sm:$0xff]  ;;  %v44_v2 = vld [vmem:[#allocation2 + $0x70] sm:$0xff] }
   0xf   :  { %164 = vmatprep.subr.mxu0 %v256_v0  ;;  %196 = vmatprep.mubr.msk.f32.mxu0 %vm257_vm0, %v256_v0  ;;  %v43_v3 = vld [vmem:[#allocation2 + $0x68] sm:$0xff]  ;;  %v42_v4 = vld [vmem:[#allocation2 + $0x60] sm:$0xff]  ;;  %v41_v5 = vld [vmem:[#allocation2 + $0x58] sm:$0xff]  ;;  %s258_s22 = smov [#allocation5]  }
  0x10   :  { %165 = vmatpush3.msra.mxu0 %v45_v1  ;;  %v40_v6 = vld [vmem:[#allocation2 + $0x50] sm:$0xff]  ;;  %v39_v7 = vld [vmem:[#allocation2 + $0x48] sm:$0xff]  ;;  %v38_v8 = vld [vmem:[#allocation2 + $0x40] sm:$0xff]  ;;  %s136_s23 = sshll.u32 %s258_s22, 4  ;;  %s137_s23 = int_to_ptr.vmem [resolvable:$true] %s136_s23 }
  0x11   :  { %166 = vmatprep.subr.mxu0 %v256_v0  ;;  %v37_v9 = vld [vmem:[#allocation2 + $0x38] sm:$0xff]  ;;  %v36_v10 = vld [vmem:[#allocation2 + $0x30] sm:$0xff]  ;;  %v35_v11 = vld [vmem:[#allocation2 + $0x28] sm:$0xff]  ;;  %p234_p6 = scmp.lt.s32.totalorder %s137_s23, %s137_s23 }
  0x12   :  { %167 = vmatpush3.msra.mxu0 %v44_v2  ;;  %v34_v12 = vld [vmem:[#allocation2 + $0x20] sm:$0xff]  ;;  %v33_v13 = vld [vmem:[#allocation2 + $0x18] sm:$0xff]  ;;  %v32_v14 = vld [vmem:[#allocation2 + $0x10] sm:$0xff] }
  0x13   :  { %168 = vmatprep.subr.mxu0 %v256_v0  ;;  %v31_v15 = vld [vmem:[#allocation2 + $0x8] sm:$0xff]  ;;  %v30_v16 = vld [vmem:[#allocation2] sm:$0xff] }
  0x14   :  { %169 = vmatpush3.msra.mxu0 %v43_v3  ;;  %v29_v17 = vld [vmem:[%s291_s0] sm:$0xff]  ;;  %s229_s0 = scalar_lea.vmem %s137_s23, 128 }
  0x15   :  { %170 = vmatprep.subr.mxu0 %v256_v0  ;;  %v145_v18 = vld [vmem:[%s293_s2] ss:$0 sm:$0xff]  ;;  %p230_p5 = scmp.ne.s32.totalorder %s137_s23, %s229_s0  ;;  %p235_p7 = scmp.lt.s32.totalorder %s229_s0, %s229_s0 }
  0x16   :  { %171 = vmatpush3.msra.mxu0 %v42_v4 }
  0x17   :  { %172 = vmatprep.subr.mxu0 %v256_v0  ;;  %p236_p8 = por %p235_p7, %p234_p6 }
  0x18   :  { %173 = vmatpush3.msra.mxu0 %v41_v5 }
  0x19   :  { %174 = vmatprep.subr.mxu0 %v256_v0  ;;  %p237_p9 = pnand %p236_p8, %p230_p5 }
  0x1a   :  { %175 = vmatpush3.msra.mxu0 %v40_v6 }
  0x1b   :  { %176 = vmatprep.subr.mxu0 %v256_v0 }
  0x1c   :  { %177 = vmatpush3.msra.mxu0 %v39_v7 }
  0x1d   :  { %178 = vmatprep.subr.mxu0 %v256_v0 }
  0x1e   :  { %179 = vmatpush3.msra.mxu0 %v38_v8 }
  0x1f   :  { %180 = vmatprep.subr.mxu0 %v256_v0 }
  0x20   :  { %181 = vmatpush3.msra.mxu0 %v37_v9 }
  0x21   :  { %182 = vmatprep.subr.mxu0 %v256_v0 }
  0x22   :  { %183 = vmatpush3.msra.mxu0 %v36_v10 }
  0x23   :  { %184 = vmatprep.subr.mxu0 %v256_v0 }
  0x24   :  { %185 = vmatpush3.msra.mxu0 %v35_v11 }
  0x25   :  { %186 = vmatprep.subr.mxu0 %v256_v0 }
  0x26   :  { %187 = vmatpush3.msra.mxu0 %v34_v12 }
  0x27   :  { %188 = vmatprep.subr.mxu0 %v256_v0 }
  0x28   :  { %189 = vmatpush3.msra.mxu0 %v33_v13 }
  0x29   :  { %190 = vmatprep.subr.mxu0 %v256_v0 }
  0x2a   :  { %191 = vmatpush3.msra.mxu0 %v32_v14 }
  0x2b   :  { %192 = vmatprep.subr.mxu0 %v256_v0 }
  0x2c   :  { %193 = vmatpush3.msra.mxu0 %v31_v15 }
  0x2d   :  { %194 = vmatprep.subr.mxu0 %v256_v0 }
  0x2e   :  { %195 = vmatpush3.msra.mxu0 %v30_v16 }
  0x2f   :  { %197 = vmatmul.mubr.f32.vlgmr.msra.gmra.mxu0 %v29_v17 }
  0xef   :  { %v119_v19 = vpop.f32.mrf.mxu0 }
  0xf0   :  { %v120_v20 = vadd.f32 %v145_v18, %v119_v19 }
  0xf1   :  { %v198_v21 = vpop.f32.mrf.mxu0 }
  0xf2   :  { %v146_v22 = vmul.f32 -1.442695, %v120_v20 }
  0xf4   :  { %205 = vpow2.f32 %v146_v22 }
 0x101   :  { %v206_v23 = vpop.eup %205 }
 0x102   :  { %v126_v24 = vadd.f32 1.0, %v206_v23 }
 0x104   :  { %207 = vrcp.f32 %v126_v24 }
 0x111   :  { %v208_v25 = vpop.eup %207 }
 0x112   :  { %129 = vst [vmem:[#allocation5] sm:$0xff] %v208_v25 }
 0x113   :  { %240 = shalt.err (!%p237_p9)
}
 0x114   :  { %139 = dma.vmem_to_hbm [thread:$0]  %s137_s23, 128, %s294_s3, [#allocation4]  }
 0x115   :  { %251 = dma.done.wait [#allocation4], 128  }
 0x116   :  { %252 = vsyncadd [#allocation4], 4294967168 }
 0x117   :  { %143 = vsyncpa [#allocation3], 1 }
 0x118   :  { %144 = vsyncpa [#allocation4], 1 }

</bundles_post_ra>
